<compile_context>
chip_gen: v7x
topology: tpu7x:2x2x1
jax: 0.10.0
libtpu: 0.0.40
codegen_flags: <defaults>
</compile_context>

<pallas_src>
import functools

import jax
import jax.numpy as jnp
from jax.experimental import pallas as pl
from jax.experimental.pallas import tpu as pltpu


def _round_up(x, m):
    return (x + m - 1) // m * m


def _vmem_capacity_bytes():
    """Per-core VMEM capacity; conservative (v7x) fallback if the query fails."""
    try:
        info = pltpu.get_tpu_info()
        cap = int(getattr(info, "vmem_capacity_bytes"))
        if cap > 0:
            return cap
    except Exception:
        pass
    return 64 * 2 ** 20


def _fused_mlp_kernel(*refs, relu_flags):
    """One batch tile of the whole MLP (static unroll over layers).

    refs = (w_0, b_0, w_1, b_1, ..., w_{L-1}, b_{L-1}, x_ref, o_ref)
      w_l : (in_pad_l, out_pad_l) bf16, zero-padded, VMEM-resident (constant block idx)
      b_l : (1, out_pad_l)        f32,  zero-padded, VMEM-resident
      x   : (tm, in_pad_0)        bf16 input tile for this batch slice
      o   : (tm, out_pad_last)    f32 output tile
    Padded weight rows/cols and bias lanes are zero and relu(0)=0, so padded lanes stay
    zero through every layer; the wrapper slices the true output back out.
    """
    L = len(relu_flags)
    x_ref = refs[2 * L]
    o_ref = refs[2 * L + 1]

    act = x_ref[...]                                   # bf16 running activation
    acc = None
    for l, relu in enumerate(relu_flags):              # static unroll (small L)
        w = refs[2 * l][...]                           # bf16 (in_pad_l, out_pad_l)
        b = refs[2 * l + 1][...]                       # f32  (1, out_pad_l)
        acc = jnp.dot(act, w, preferred_element_type=jnp.float32)
        acc = acc + b                                  # f32 epilogue (safe on v5e)
        if relu:
            acc = jnp.maximum(acc, 0.0)
        act = acc.astype(jnp.bfloat16)                 # bf16 carry to next layer
    o_ref[...] = acc.astype(o_ref.dtype)               # final layer stored in f32


def pack_params(params):
    """One-time packing: per-layer lane-dense zero-padding, weights bf16, biases f32.

    params: list of (W:(in,out) f32, b:(1,out) f32, relu:bool)
    """
    ws, bs, relu_flags = [], [], []
    for (w, b, relu) in params:
        fi, fo = w.shape
        pi, po = _round_up(fi, 128), _round_up(fo, 128)
        wp = jnp.zeros((pi, po), jnp.bfloat16).at[:fi, :fo].set(w.astype(jnp.bfloat16))
        bp = jnp.zeros((1, po), jnp.float32).at[:, :fo].set(b.astype(jnp.float32))
        ws.append(wp)
        bs.append(bp)
        relu_flags.append(bool(relu))
    return tuple(ws), tuple(bs), tuple(relu_flags)


@functools.partial(
    jax.jit, static_argnames=("relu_flags", "out_dim", "max_tile_m", "interpret"))
def mlp_forward(x, ws, bs, *, relu_flags, out_dim, max_tile_m=256, interpret=False):
    """Fused forward pass. ws/bs are the pre-padded stacks from pack_params."""
    L = len(relu_flags)
    assert len(ws) == L and len(bs) == L

    B, in_dim = x.shape
    in_pad = ws[0].shape[0]
    out_pad = ws[-1].shape[1]
    max_po = max(int(w.shape[1]) for w in ws)

    # --- VMEM-aware tile sizing (portable across v5e/v6e 128 MiB and v7x 64 MiB). ---
    vmem_cap = _vmem_capacity_bytes()
    weight_bytes = (sum(int(w.size) * 2 for w in ws)
                    + sum(int(b.size) * 4 for b in bs))

    def _tile_bytes(t):
        return (2 * t * in_pad * 2        # double-buffered bf16 input tile
                + 2 * t * out_pad * 4     # double-buffered f32 output tile
                + 2 * t * max_po * 4)     # live f32 accumulator / bf16 act headroom

    tm = min(_round_up(B, 8), max_tile_m)
    # Resident weights may be held twice by the pipeliner; shrink tm until it fits.
    while tm > 8 and 2 * weight_bytes + _tile_bytes(tm) > int(0.6 * vmem_cap):
        tm = max(8, _round_up(tm // 2, 8))
    B_pad = _round_up(B, tm)

    vmem_needed = 2 * weight_bytes + _tile_bytes(tm)
    vmem_limit = int(min(0.85 * vmem_cap, max(2 * vmem_needed, 16 * 2 ** 20)))

    # Input: batch-padded, feature-padded, bf16 (halves DMA bytes; MXU operand dtype).
    x_pad = jnp.zeros((B_pad, in_pad), jnp.bfloat16).at[:B, :in_dim].set(
        x.astype(jnp.bfloat16))

    # --- Build specs: weights/biases resident (constant block index), x/o batch-tiled.
    in_specs = []
    inputs = []
    for w, b in zip(ws, bs):
        in_specs.append(pl.BlockSpec(w.shape, lambda i: (0, 0)))
        in_specs.append(pl.BlockSpec(b.shape, lambda i: (0, 0)))
        inputs.append(w)
        inputs.append(b)
    in_specs.append(pl.BlockSpec((tm, in_pad), lambda i: (i, 0)))
    inputs.append(x_pad)

    kernel = functools.partial(_fused_mlp_kernel, relu_flags=relu_flags)
    flops = 2 * B_pad * sum(int(w.shape[0]) * int(w.shape[1]) for w in ws)
    bytes_accessed = (weight_bytes + x_pad.size * 2 + B_pad * out_pad * 4)

    out_padded = pl.pallas_call(
        kernel,
        out_shape=jax.ShapeDtypeStruct((B_pad, out_pad), jnp.float32),
        grid_spec=pltpu.PrefetchScalarGridSpec(
            num_scalar_prefetch=0,
            grid=(B_pad // tm,),
            in_specs=in_specs,
            out_specs=pl.BlockSpec((tm, out_pad), lambda i: (i, 0)),
        ),
        compiler_params=pltpu.CompilerParams(
            dimension_semantics=("parallel",),       # megacore-shard batch on v7x
            vmem_limit_bytes=vmem_limit,
        ),
        cost_estimate=pl.CostEstimate(
            flops=flops, transcendentals=0, bytes_accessed=bytes_accessed),
        interpret=interpret,
    )(*inputs)
    return out_padded[:B, :out_dim]


def init_mlp_params(key, input_size, output_size, hidden_input_size,
                    hidden_output_size, num_layers):
    """Builds the same layer sequence as the PyTorch MLPmodel.__init__.

    Returns a list of (W, b, apply_relu) with W shaped (in, out) (transposed vs torch).
    """
    dims = []
    dims.append((input_size, hidden_input_size, True))
    hidden_size = hidden_input_size
    for i in range(num_layers - 1):
        dims.append((hidden_size, hidden_size, True))
        if i == num_layers - 2:
            dims.append((hidden_size, hidden_output_size, True))
            hidden_size = hidden_output_size
    if num_layers == 1:
        dims.append((hidden_input_size, output_size, False))
    else:
        dims.append((hidden_output_size, output_size, False))

    params = []
    for (fan_in, fan_out, relu) in dims:
        key, kw, kb = jax.random.split(key, 3)
        bound = 1.0 / jnp.sqrt(fan_in)  # mimic PyTorch nn.Linear default init
        w = jax.random.uniform(kw, (fan_in, fan_out), jnp.float32, -bound, bound)
        b = jax.random.uniform(kb, (1, fan_out), jnp.float32, -bound, bound)
        params.append((w, b, relu))
    return params


if __name__ == "__main__":
    # Small shapes consistent with the module's forward: x is (batch, input_size).
    batch = 8
    input_size = 32
    output_size = 16
    hidden_input_size = 64
    hidden_output_size = 32
    num_layers = 3

    key = jax.random.PRNGKey(0)
    key, kx = jax.random.split(key)
    x = jax.random.normal(kx, (batch, input_size), jnp.float32)

    params = init_mlp_params(key, input_size, output_size,
                             hidden_input_size, hidden_output_size, num_layers)

    # One-time packing (per-layer lane-dense padding, bf16 weights).
    ws, bs, relu_flags = pack_params(params)

    out = mlp_forward(x, ws, bs, relu_flags=relu_flags, out_dim=output_size)
    jax.block_until_ready(out)
    assert out.shape == (batch, output_size)

    # Reference 1: same arithmetic as the kernel (bf16 operands + bf16 activation
    # carry, f32 accumulate / epilogue).
    act = x.astype(jnp.bfloat16)
    acc = None
    for (w, b, relu) in params:
        acc = jnp.dot(act, w.astype(jnp.bfloat16),
                      preferred_element_type=jnp.float32) + b
        if relu:
            acc = jnp.maximum(acc, 0.0)
        act = acc.astype(jnp.bfloat16)
    assert jnp.allclose(out, acc, atol=2e-3, rtol=2e-3)

    # Reference 2: pure f32 (same math as the PyTorch Sequential) — loose tolerance
    # since the kernel uses bf16 MXU operands and bf16 activation carries.
    ref_f32 = x
    for (w, b, relu) in params:
        ref_f32 = ref_f32 @ w + b
        if relu:
            ref_f32 = jnp.maximum(ref_f32, 0.0)
    assert jnp.allclose(out, ref_f32, atol=5e-2, rtol=5e-2)

    print("KERNEL_OK")
</pallas_src>

<mosaic_0001>
module attributes {stable_mosaic.version = 11 : i64} {
  func.func @_fused_mlp_kernel(%arg0: i32, %arg1: memref<128x128xbf16, #tpu.memory_space<vmem>>, %arg2: memref<1x128xf32, #tpu.memory_space<vmem>>, %arg3: memref<128x128xbf16, #tpu.memory_space<vmem>>, %arg4: memref<1x128xf32, #tpu.memory_space<vmem>>, %arg5: memref<128x128xbf16, #tpu.memory_space<vmem>>, %arg6: memref<1x128xf32, #tpu.memory_space<vmem>>, %arg7: memref<128x128xbf16, #tpu.memory_space<vmem>>, %arg8: memref<1x128xf32, #tpu.memory_space<vmem>>, %arg9: memref<128x128xbf16, #tpu.memory_space<vmem>>, %arg10: memref<1x128xf32, #tpu.memory_space<vmem>>, %arg11: memref<8x128xbf16, #tpu.memory_space<vmem>>, %arg12: memref<8x128xf32, #tpu.memory_space<vmem>>) attributes {dimension_semantics = [#tpu.dimension_semantics<parallel>], iteration_bounds = array<i64: 1>, scalar_prefetch = 0 : i64, scratch_operands = 0 : i64, tpu.core_type = #tpu.core_type<tc>, window_params = [{pipeline_mode = #tpu.pipeline_mode<synchronous>, transform_indices = @transform_0, window_bounds = array<i64: 128, 128>}, {pipeline_mode = #tpu.pipeline_mode<synchronous>, transform_indices = @transform_1, window_bounds = array<i64: 1, 128>}, {pipeline_mode = #tpu.pipeline_mode<synchronous>, transform_indices = @transform_2, window_bounds = array<i64: 128, 128>}, {pipeline_mode = #tpu.pipeline_mode<synchronous>, transform_indices = @transform_3, window_bounds = array<i64: 1, 128>}, {pipeline_mode = #tpu.pipeline_mode<synchronous>, transform_indices = @transform_4, window_bounds = array<i64: 128, 128>}, {pipeline_mode = #tpu.pipeline_mode<synchronous>, transform_indices = @transform_5, window_bounds = array<i64: 1, 128>}, {pipeline_mode = #tpu.pipeline_mode<synchronous>, transform_indices = @transform_6, window_bounds = array<i64: 128, 128>}, {pipeline_mode = #tpu.pipeline_mode<synchronous>, transform_indices = @transform_7, window_bounds = array<i64: 1, 128>}, {pipeline_mode = #tpu.pipeline_mode<synchronous>, transform_indices = @transform_8, window_bounds = array<i64: 128, 128>}, {pipeline_mode = #tpu.pipeline_mode<synchronous>, transform_indices = @transform_9, window_bounds = array<i64: 1, 128>}, {transform_indices = @transform_10, window_bounds = array<i64: 8, 128>}, {transform_indices = @transform_11, window_bounds = array<i64: 8, 128>}]} {
    %c0 = arith.constant 0 : index
    %c0_0 = arith.constant 0 : index
    %0 = vector.load %arg11[%c0, %c0_0] : memref<8x128xbf16, #tpu.memory_space<vmem>>, vector<8x128xbf16>
    %c0_1 = arith.constant 0 : index
    %c0_2 = arith.constant 0 : index
    %1 = vector.load %arg1[%c0_1, %c0_2] : memref<128x128xbf16, #tpu.memory_space<vmem>>, vector<128x128xbf16>
    %c0_3 = arith.constant 0 : index
    %c0_4 = arith.constant 0 : index
    %2 = vector.load %arg2[%c0_3, %c0_4] : memref<1x128xf32, #tpu.memory_space<vmem>>, vector<1x128xf32>
    %cst = arith.constant dense<0.000000e+00> : vector<8x128xf32>
    %3 = tpu.matmul %0, %1, %cst {dimension_numbers = #tpu.dot_dimension_numbers<[1], [0], [0], [1], [0, 0, 1, 1], [], []>} : vector<8x128xbf16>, vector<128x128xbf16>, vector<8x128xf32> -> vector<8x128xf32>
    %4 = vector.broadcast %2 : vector<1x128xf32> to vector<8x128xf32>
    %5 = arith.addf %3, %4 : vector<8x128xf32>
    %cst_5 = arith.constant 0.000000e+00 : f32
    %6 = vector.broadcast %cst_5 : f32 to vector<8x128xf32>
    %7 = arith.maximumf %5, %6 : vector<8x128xf32>
    %8 = arith.truncf %7 : vector<8x128xf32> to vector<8x128xbf16>
    %c0_6 = arith.constant 0 : index
    %c0_7 = arith.constant 0 : index
    %9 = vector.load %arg3[%c0_6, %c0_7] : memref<128x128xbf16, #tpu.memory_space<vmem>>, vector<128x128xbf16>
    %c0_8 = arith.constant 0 : index
    %c0_9 = arith.constant 0 : index
    %10 = vector.load %arg4[%c0_8, %c0_9] : memref<1x128xf32, #tpu.memory_space<vmem>>, vector<1x128xf32>
    %cst_10 = arith.constant dense<0.000000e+00> : vector<8x128xf32>
    %11 = tpu.matmul %8, %9, %cst_10 {dimension_numbers = #tpu.dot_dimension_numbers<[1], [0], [0], [1], [0, 0, 1, 1], [], []>} : vector<8x128xbf16>, vector<128x128xbf16>, vector<8x128xf32> -> vector<8x128xf32>
    %12 = vector.broadcast %10 : vector<1x128xf32> to vector<8x128xf32>
    %13 = arith.addf %11, %12 : vector<8x128xf32>
    %cst_11 = arith.constant 0.000000e+00 : f32
    %14 = vector.broadcast %cst_11 : f32 to vector<8x128xf32>
    %15 = arith.maximumf %13, %14 : vector<8x128xf32>
    %16 = arith.truncf %15 : vector<8x128xf32> to vector<8x128xbf16>
    %c0_12 = arith.constant 0 : index
    %c0_13 = arith.constant 0 : index
    %17 = vector.load %arg5[%c0_12, %c0_13] : memref<128x128xbf16, #tpu.memory_space<vmem>>, vector<128x128xbf16>
    %c0_14 = arith.constant 0 : index
    %c0_15 = arith.constant 0 : index
    %18 = vector.load %arg6[%c0_14, %c0_15] : memref<1x128xf32, #tpu.memory_space<vmem>>, vector<1x128xf32>
    %cst_16 = arith.constant dense<0.000000e+00> : vector<8x128xf32>
    %19 = tpu.matmul %16, %17, %cst_16 {dimension_numbers = #tpu.dot_dimension_numbers<[1], [0], [0], [1], [0, 0, 1, 1], [], []>} : vector<8x128xbf16>, vector<128x128xbf16>, vector<8x128xf32> -> vector<8x128xf32>
    %20 = vector.broadcast %18 : vector<1x128xf32> to vector<8x128xf32>
    %21 = arith.addf %19, %20 : vector<8x128xf32>
    %cst_17 = arith.constant 0.000000e+00 : f32
    %22 = vector.broadcast %cst_17 : f32 to vector<8x128xf32>
    %23 = arith.maximumf %21, %22 : vector<8x128xf32>
    %24 = arith.truncf %23 : vector<8x128xf32> to vector<8x128xbf16>
    %c0_18 = arith.constant 0 : index
    %c0_19 = arith.constant 0 : index
    %25 = vector.load %arg7[%c0_18, %c0_19] : memref<128x128xbf16, #tpu.memory_space<vmem>>, vector<128x128xbf16>
    %c0_20 = arith.constant 0 : index
    %c0_21 = arith.constant 0 : index
    %26 = vector.load %arg8[%c0_20, %c0_21] : memref<1x128xf32, #tpu.memory_space<vmem>>, vector<1x128xf32>
    %cst_22 = arith.constant dense<0.000000e+00> : vector<8x128xf32>
    %27 = tpu.matmul %24, %25, %cst_22 {dimension_numbers = #tpu.dot_dimension_numbers<[1], [0], [0], [1], [0, 0, 1, 1], [], []>} : vector<8x128xbf16>, vector<128x128xbf16>, vector<8x128xf32> -> vector<8x128xf32>
    %28 = vector.broadcast %26 : vector<1x128xf32> to vector<8x128xf32>
    %29 = arith.addf %27, %28 : vector<8x128xf32>
    %cst_23 = arith.constant 0.000000e+00 : f32
    %30 = vector.broadcast %cst_23 : f32 to vector<8x128xf32>
    %31 = arith.maximumf %29, %30 : vector<8x128xf32>
    %32 = arith.truncf %31 : vector<8x128xf32> to vector<8x128xbf16>
    %c0_24 = arith.constant 0 : index
    %c0_25 = arith.constant 0 : index
    %33 = vector.load %arg9[%c0_24, %c0_25] : memref<128x128xbf16, #tpu.memory_space<vmem>>, vector<128x128xbf16>
    %c0_26 = arith.constant 0 : index
    %c0_27 = arith.constant 0 : index
    %34 = vector.load %arg10[%c0_26, %c0_27] : memref<1x128xf32, #tpu.memory_space<vmem>>, vector<1x128xf32>
    %cst_28 = arith.constant dense<0.000000e+00> : vector<8x128xf32>
    %35 = tpu.matmul %32, %33, %cst_28 {dimension_numbers = #tpu.dot_dimension_numbers<[1], [0], [0], [1], [0, 0, 1, 1], [], []>} : vector<8x128xbf16>, vector<128x128xbf16>, vector<8x128xf32> -> vector<8x128xf32>
    %36 = vector.broadcast %34 : vector<1x128xf32> to vector<8x128xf32>
    %37 = arith.addf %35, %36 : vector<8x128xf32>
    %c0_29 = arith.constant 0 : index
    %c0_30 = arith.constant 0 : index
    %38 = vector.load %arg12[%c0_29, %c0_30] : memref<8x128xf32, #tpu.memory_space<vmem>>, vector<8x128xf32>
    tpu.vector_store %arg12[%c0_29, %c0_30], %37 {strides = array<i32>} : memref<8x128xf32, #tpu.memory_space<vmem>>, vector<8x128xf32>,
    return
  }
  func.func @transform_0(%arg0: i32) -> (i32, i32) {
    %c0_i32 = arith.constant 0 : i32
    %c0_i32_0 = arith.constant 0 : i32
    %c0_i32_1 = arith.constant 0 : i32
    return %c0_i32, %c0_i32_0 : i32, i32
  }
  func.func @transform_1(%arg0: i32) -> (i32, i32) {
    %c0_i32 = arith.constant 0 : i32
    %c0_i32_0 = arith.constant 0 : i32
    %c0_i32_1 = arith.constant 0 : i32
    return %c0_i32, %c0_i32_0 : i32, i32
  }
  func.func @transform_2(%arg0: i32) -> (i32, i32) {
    %c0_i32 = arith.constant 0 : i32
    %c0_i32_0 = arith.constant 0 : i32
    %c0_i32_1 = arith.constant 0 : i32
    return %c0_i32, %c0_i32_0 : i32, i32
  }
  func.func @transform_3(%arg0: i32) -> (i32, i32) {
    %c0_i32 = arith.constant 0 : i32
    %c0_i32_0 = arith.constant 0 : i32
    %c0_i32_1 = arith.constant 0 : i32
    return %c0_i32, %c0_i32_0 : i32, i32
  }
  func.func @transform_4(%arg0: i32) -> (i32, i32) {
    %c0_i32 = arith.constant 0 : i32
    %c0_i32_0 = arith.constant 0 : i32
    %c0_i32_1 = arith.constant 0 : i32
    return %c0_i32, %c0_i32_0 : i32, i32
  }
  func.func @transform_5(%arg0: i32) -> (i32, i32) {
    %c0_i32 = arith.constant 0 : i32
    %c0_i32_0 = arith.constant 0 : i32
    %c0_i32_1 = arith.constant 0 : i32
    return %c0_i32, %c0_i32_0 : i32, i32
  }
  func.func @transform_6(%arg0: i32) -> (i32, i32) {
    %c0_i32 = arith.constant 0 : i32
    %c0_i32_0 = arith.constant 0 : i32
    %c0_i32_1 = arith.constant 0 : i32
    return %c0_i32, %c0_i32_0 : i32, i32
  }
  func.func @transform_7(%arg0: i32) -> (i32, i32) {
    %c0_i32 = arith.constant 0 : i32
    %c0_i32_0 = arith.constant 0 : i32
    %c0_i32_1 = arith.constant 0 : i32
    return %c0_i32, %c0_i32_0 : i32, i32
  }
  func.func @transform_8(%arg0: i32) -> (i32, i32) {
    %c0_i32 = arith.constant 0 : i32
    %c0_i32_0 = arith.constant 0 : i32
    %c0_i32_1 = arith.constant 0 : i32
    return %c0_i32, %c0_i32_0 : i32, i32
  }
  func.func @transform_9(%arg0: i32) -> (i32, i32) {
    %c0_i32 = arith.constant 0 : i32
    %c0_i32_0 = arith.constant 0 : i32
    %c0_i32_1 = arith.constant 0 : i32
    return %c0_i32, %c0_i32_0 : i32, i32
  }
  func.func @transform_10(%arg0: i32) -> (i32, i32) {
    %c0_i32 = arith.constant 0 : i32
    %c0_i32_0 = arith.constant 0 : i32
    return %arg0, %c0_i32 : i32, i32
  }
  func.func @transform_11(%arg0: i32) -> (i32, i32) {
    %c0_i32 = arith.constant 0 : i32
    %c0_i32_0 = arith.constant 0 : i32
    return %arg0, %c0_i32 : i32, i32
  }
}

</mosaic_0001>

<bundles_post_ra>
// kernel: mlp_forward.1
= control target key start
LH: loop header
LB: loop body
LE: loop exit
PB: predicated region body
PF: predicated region fallthrough
CT: control target
= control target key end

     0   :  { %16 = vsyncpa [#allocation3], 0  ;;  %s1309_s0 = inlined_call_operand.hbm [shape: bf16[128,128], index: 0, kind: input, shape index: {}]   ;;  %s1310_s1 = inlined_call_operand.vmem [shape: f32[1,128], index: 1, kind: input, shape index: {}]   ;;  %s1311_s2 = inlined_call_operand.hbm [shape: bf16[128,128], index: 2, kind: input, shape index: {}]   ;;  %s1312_s3 = inlined_call_operand.vmem [shape: f32[1,128], index: 3, kind: input, shape index: {}]   ;;  %s1313_s4 = inlined_call_operand.hbm [shape: bf16[128,128], index: 4, kind: input, shape index: {}]   ;;  %s1314_s5 = inlined_call_operand.vmem [shape: f32[1,128], index: 5, kind: input, shape index: {}]   ;;  %s1315_s6 = inlined_call_operand.hbm [shape: bf16[128,128], index: 6, kind: input, shape index: {}]   ;;  %s1316_s7 = inlined_call_operand.vmem [shape: f32[1,128], index: 7, kind: input, shape index: {}]   ;;  %s1317_s8 = inlined_call_operand.hbm [shape: bf16[128,128], index: 8, kind: input, shape index: {}]   ;;  %s1318_s9 = inlined_call_operand.vmem [shape: f32[1,128], index: 9, kind: input, shape index: {}]   ;;  %s1319_s10 = inlined_call_operand.vmem [shape: bf16[8,128], index: 10, kind: input, shape index: {}]   ;;  %s1320_s11 = inlined_call_operand.hbm [shape: f32[8,128], index: 11, kind: output, shape index: {}]  }
   0x1   :  { %17 = vsyncpa [#allocation6], 0 }
   0x2   :  { %18 = vsyncpa [#allocation9], 0 }
   0x3   :  { %19 = vsyncpa [#allocation4], 0  ;;  %s1070_s17 = smov [#allocation5]   ;;  %s1071_s19 = smov [#allocation8]  }
   0x4   :  { %s39_s18 = sshll.u32 %s1070_s17, 4  ;;  %s67_s20 = sshll.u32 %s1071_s19, 4  ;;  %s40_s18 = int_to_ptr.vmem [resolvable:$true] %s39_s18  ;;  %s1140_s20 = int_to_ptr.vmem [resolvable:$true] %s67_s20 }
   0x5   :  { %s930_s23 = scalar_lea.hbm %s1311_s2, 1024 }
   0x6   :  { %p931_p0 = scmp.ne.s32.totalorder %s1311_s2, %s930_s23  ;;  %p934_p1 = scmp.lt.u32.totalorder %s930_s23, %s1311_s2 }
   0x8   :  { %p936_p2 = pnand %p934_p1, %p931_p0 }
   0xa   :  { %939 = shalt.err (!%p936_p2)
}
   0xb   :  { %s940_s28 = scalar_lea.vmem %s40_s18, 1024  ;;  %p945_p4 = scmp.lt.s32.totalorder %s40_s18, %s40_s18 }
   0xc   :  { %p941_p3 = scmp.ne.s32.totalorder %s40_s18, %s940_s28  ;;  %p946_p5 = scmp.lt.s32.totalorder %s940_s28, %s940_s28 }
   0xe   :  { %p947_p6 = por %p946_p5, %p945_p4 }
  0x10   :  { %p948_p7 = pnand %p947_p6, %p941_p3 }
  0x12   :  { %951 = shalt.err (!%p948_p7)
}
  0x13   :  { %s1072_s29 = smov 64   ;;  %s1073_s30 = smov 4  }
  0x14   :  { %45 = dma.hbm_to_vmem [thread:$0]  %s1311_s2, 1024, %s40_s18, [#allocation6], %s1072_s29, %s1072_s29, %s1073_s30  }
  0x15   :  { %s952_s16 = scalar_lea.hbm %s1315_s6, 1024 }
  0x16   :  { %p953_p8 = scmp.ne.s32.totalorder %s1315_s6, %s952_s16  ;;  %p956_p9 = scmp.lt.u32.totalorder %s952_s16, %s1315_s6 }
  0x18   :  { %p958_p10 = pnand %p956_p9, %p953_p8 }
  0x1a   :  { %961 = shalt.err (!%p958_p10)
}
  0x1b   :  { %s962_s23 = scalar_lea.vmem %s1140_s20, 1024  ;;  %p967_p12 = scmp.lt.s32.totalorder %s1140_s20, %s1140_s20 }
  0x1c   :  { %p963_p11 = scmp.ne.s32.totalorder %s1140_s20, %s962_s23  ;;  %p968_p13 = scmp.lt.s32.totalorder %s962_s23, %s962_s23 }
  0x1e   :  { %p969_p0 = por %p968_p13, %p967_p12 }
  0x20   :  { %p970_p1 = pnand %p969_p0, %p963_p11 }
  0x22   :  { %973 = shalt.err (!%p970_p1)
}
  0x23   :  { %73 = dma.hbm_to_vmem [thread:$0]  %s1315_s6, 1024, %s1140_s20, [#allocation9], %s1072_s29, %s1072_s29, %s1073_s30  }
  0x24   :  { %s1074_s24 = smov [#allocation2]   ;;  %s1075_s26 = smov [#allocation7]  }
  0x25   :  { %s25_s25 = sshll.u32 %s1074_s24, 4  ;;  %s53_s27 = sshll.u32 %s1075_s26, 4  ;;  %s26_s25 = int_to_ptr.vmem [resolvable:$true] %s25_s25  ;;  %s1177_s27 = int_to_ptr.vmem [resolvable:$true] %s53_s27 }
  0x26   :  { %s974_s13 = scalar_lea.hbm %s1309_s0, 1024 }
  0x27   :  { %p975_p2 = scmp.ne.s32.totalorder %s1309_s0, %s974_s13  ;;  %p978_p3 = scmp.lt.u32.totalorder %s974_s13, %s1309_s0 }
  0x29   :  { %p980_p4 = pnand %p978_p3, %p975_p2 }
  0x2b   :  { %983 = shalt.err (!%p980_p4)
}
  0x2c   :  { %s984_s6 = scalar_lea.vmem %s26_s25, 1024  ;;  %p989_p6 = scmp.lt.s32.totalorder %s26_s25, %s26_s25 }
  0x2d   :  { %p985_p5 = scmp.ne.s32.totalorder %s26_s25, %s984_s6  ;;  %p990_p7 = scmp.lt.s32.totalorder %s984_s6, %s984_s6 }
  0x2f   :  { %p991_p8 = por %p990_p7, %p989_p6 }
  0x31   :  { %p992_p9 = pnand %p991_p8, %p985_p5 }
  0x33   :  { %995 = shalt.err (!%p992_p9)
}
  0x34   :  { %31 = dma.hbm_to_vmem [thread:$0]  %s1309_s0, 1024, %s26_s25, [#allocation3], %s1072_s29, %s1072_s29, %s1073_s30  }
  0x35   :  { %s996_s23 = scalar_lea.hbm %s1313_s4, 1024 }
  0x36   :  { %p997_p10 = scmp.ne.s32.totalorder %s1313_s4, %s996_s23  ;;  %p1000_p11 = scmp.lt.u32.totalorder %s996_s23, %s1313_s4 }
  0x38   :  { %p1002_p12 = pnand %p1000_p11, %p997_p10 }
  0x3a   :  { %1005 = shalt.err (!%p1002_p12)
}
  0x3b   :  { %s1006_s28 = scalar_lea.vmem %s1177_s27, 1024  ;;  %p1011_p0 = scmp.lt.s32.totalorder %s1177_s27, %s1177_s27 }
  0x3c   :  { %p1007_p13 = scmp.ne.s32.totalorder %s1177_s27, %s1006_s28  ;;  %p1012_p1 = scmp.lt.s32.totalorder %s1006_s28, %s1006_s28 }
  0x3e   :  { %p1013_p2 = por %p1012_p1, %p1011_p0 }
  0x40   :  { %p1014_p3 = pnand %p1013_p2, %p1007_p13 }
  0x42   :  { %1017 = shalt.err (!%p1014_p3)
}
  0x43   :  { %59 = dma.hbm_to_vmem [thread:$0]  %s1313_s4, 1024, %s1177_s27, [#allocation6], %s1072_s29, %s1072_s29, %s1073_s30  }
  0x44   :  { %s1076_s12 = smov [#allocation10]   ;;  %s1018_s16 = scalar_lea.hbm %s1317_s8, 1024 }
  0x45   :  { %s81_s13 = sshll.u32 %s1076_s12, 4  ;;  %p1019_p4 = scmp.ne.s32.totalorder %s1317_s8, %s1018_s16  ;;  %s82_s13 = int_to_ptr.vmem [resolvable:$true] %s81_s13 }
  0x46   :  { %p1022_p5 = scmp.lt.u32.totalorder %s1018_s16, %s1317_s8 }
  0x48   :  { %p1024_p6 = pnand %p1022_p5, %p1019_p4 }
  0x4a   :  { %1027 = shalt.err (!%p1024_p6)
}
  0x4b   :  { %s1028_s21 = scalar_lea.vmem %s82_s13, 1024  ;;  %p1033_p8 = scmp.lt.s32.totalorder %s82_s13, %s82_s13 }
  0x4c   :  { %p1029_p7 = scmp.ne.s32.totalorder %s82_s13, %s1028_s21  ;;  %p1034_p9 = scmp.lt.s32.totalorder %s1028_s21, %s1028_s21 }
  0x4e   :  { %p1035_p10 = por %p1034_p9, %p1033_p8 }
  0x50   :  { %p1036_p11 = pnand %p1035_p10, %p1029_p7 }
  0x52   :  { %1039 = shalt.err (!%p1036_p11)
}
  0x53   :  { %87 = dma.hbm_to_vmem [thread:$0]  %s1317_s8, 1024, %s82_s13, [#allocation9], %s1072_s29, %s1072_s29, %s1073_s30  }
  0x54   :  { %1062 = dma.done.wait [#allocation3], 1024  }
  0x55   :  { %1063 = vsyncadd [#allocation3], 4294966272 }
  0x56   :  { %1064 = dma.done.wait [#allocation6], 2048  }
  0x57   :  { %1065 = vsyncadd [#allocation6], 4294965248 }
  0x58   :  { %1066 = dma.done.wait [#allocation9], 2048  }
  0x59   :  { %1067 = vsyncadd [#allocation9], 4294965248  ;;  %v1077_v0 = vmov 0.0   ;;  %vm1078_vm0 = vmmov 0   ;;  %v890_v1 = vld [vmem:[#allocation2] sm:$0xff]   ;;  %v891_v2 = vld [vmem:[#allocation2 + $0x8] sm:$0xff]  }
  0x5a   :  { %780 = vmatprep.subr.bf16.mxu0 %v1077_v0  ;;  %796 = vmatprep.mubr.msk.bf16.mxu0 %vm1078_vm0, %v1077_v0  ;;  %v892_v3 = vld [vmem:[#allocation2 + $0x10] sm:$0xff]   ;;  %v898_v4 = vld [vmem:[#allocation5] sm:$0xff]   ;;  %v893_v5 = vld [vmem:[#allocation2 + $0x18] sm:$0xff]   ;;  %s1079_s26 = smov [#allocation11]  }
  0x5b   :  { %800 = vmatprep.subr.bf16.mxu1 %v1077_v0  ;;  %816 = vmatprep.mubr.msk.bf16.mxu1 %vm1078_vm0, %v1077_v0  ;;  %v899_v6 = vld [vmem:[#allocation5 + $0x8] sm:$0xff]   ;;  %v894_v7 = vld [vmem:[#allocation2 + $0x20] sm:$0xff]   ;;  %v900_v8 = vld [vmem:[#allocation5 + $0x10] sm:$0xff]   ;;  %s679_s28 = sshll.u32 %s1079_s26, 4  ;;  %s680_s28 = int_to_ptr.vmem [resolvable:$true] %s679_s28 }
  0x5c   :  { %781 = vmatpush3.bf16.msra.mxu0 %v890_v1  ;;  %801 = vmatpush3.bf16.msra.mxu1 %v898_v4  ;;  %v895_v9 = vld [vmem:[#allocation2 + $0x28] sm:$0xff]   ;;  %v901_v10 = vld [vmem:[#allocation5 + $0x18] sm:$0xff]   ;;  %v896_v11 = vld [vmem:[#allocation2 + $0x30] sm:$0xff]   ;;  %p1045_p13 = scmp.lt.s32.totalorder %s680_s28, %s680_s28 }
  0x5d   :  { %782 = vmatprep.subr.bf16.mxu0 %v1077_v0  ;;  %802 = vmatprep.subr.bf16.mxu1 %v1077_v0  ;;  %v902_v12 = vld [vmem:[#allocation5 + $0x20] sm:$0xff]   ;;  %v897_v13 = vld [vmem:[#allocation2 + $0x38] sm:$0xff]   ;;  %v903_v14 = vld [vmem:[#allocation5 + $0x28] sm:$0xff]  }
  0x5e   :  { %v108_v15 = vld [vmem:[%s1319_s10] sm:$0xf]  ;;  %v904_v16 = vld [vmem:[#allocation5 + $0x30] sm:$0xff]   ;;  %v905_v17 = vld [vmem:[#allocation5 + $0x38] sm:$0xff]  }
  0x5f   :  { %v906_v18 = vld [vmem:[#allocation7] sm:$0xff]   ;;  %v907_v19 = vld [vmem:[#allocation7 + $0x8] sm:$0xff]   ;;  %v908_v20 = vld [vmem:[#allocation7 + $0x10] sm:$0xff]  }
  0x60   :  { %783 = vmatpush3.bf16.msra.mxu0 %v891_v2  ;;  %803 = vmatpush3.bf16.msra.mxu1 %v899_v6  ;;  %v909_v21 = vld [vmem:[#allocation7 + $0x18] sm:$0xff]   ;;  %v910_v22 = vld [vmem:[#allocation7 + $0x20] sm:$0xff]   ;;  %v911_v23 = vld [vmem:[#allocation7 + $0x28] sm:$0xff]  }
  0x61   :  { %784 = vmatprep.subr.bf16.mxu0 %v1077_v0  ;;  %804 = vmatprep.subr.bf16.mxu1 %v1077_v0  ;;  %v690_v24 = vld [vmem:[%s1310_s1] ss:$0 sm:$0xff]  ;;  %v912_v32 = vld [vmem:[#allocation7 + $0x30] sm:$0xff]   ;;  %v913_v33 = vld [vmem:[#allocation7 + $0x38] sm:$0xff]  }
  0x62   :  { %v914_v34 = vld [vmem:[#allocation8] sm:$0xff]   ;;  %v915_v35 = vld [vmem:[#allocation8 + $0x8] sm:$0xff]   ;;  %v916_v36 = vld [vmem:[#allocation8 + $0x10] sm:$0xff]  }
  0x63   :  { %v917_v37 = vld [vmem:[#allocation8 + $0x18] sm:$0xff]   ;;  %v918_v38 = vld [vmem:[#allocation8 + $0x20] sm:$0xff]   ;;  %v919_v39 = vld [vmem:[#allocation8 + $0x28] sm:$0xff]  }
  0x64   :  { %785 = vmatpush3.bf16.msra.mxu0 %v892_v3  ;;  %805 = vmatpush3.bf16.msra.mxu1 %v900_v8  ;;  %v699_v40 = vld [vmem:[%s1312_s3] ss:$0 sm:$0xff]  ;;  %v920_v48 = vld [vmem:[#allocation8 + $0x30] sm:$0xff]   ;;  %v921_v49 = vld [vmem:[#allocation8 + $0x38] sm:$0xff]  }
  0x65   :  { %786 = vmatprep.subr.bf16.mxu0 %v1077_v0  ;;  %806 = vmatprep.subr.bf16.mxu1 %v1077_v0  ;;  %v922_v50 = vld [vmem:[#allocation10] sm:$0xff]   ;;  %v923_v51 = vld [vmem:[#allocation10 + $0x8] sm:$0xff]   ;;  %v924_v52 = vld [vmem:[#allocation10 + $0x10] sm:$0xff]  }
  0x66   :  { %v925_v53 = vld [vmem:[#allocation10 + $0x18] sm:$0xff]   ;;  %v926_v54 = vld [vmem:[#allocation10 + $0x20] sm:$0xff]   ;;  %v927_v55 = vld [vmem:[#allocation10 + $0x28] sm:$0xff]  }
  0x67   :  { %v708_v56 = vld [vmem:[%s1314_s5] ss:$0 sm:$0xff]  ;;  %v928_v1 = vld [vmem:[#allocation10 + $0x30] sm:$0xff]   ;;  %v929_v2 = vld [vmem:[#allocation10 + $0x38] sm:$0xff]  }
  0x68   :  { %787 = vmatpush3.bf16.msra.mxu0 %v893_v5  ;;  %807 = vmatpush3.bf16.msra.mxu1 %v901_v10  ;;  %v717_v3 = vld [vmem:[%s1316_s7] ss:$0 sm:$0xff]  ;;  %s1040_s7 = scalar_lea.vmem %s680_s28, 128 }
  0x69   :  { %788 = vmatprep.subr.bf16.mxu0 %v1077_v0  ;;  %808 = vmatprep.subr.bf16.mxu1 %v1077_v0  ;;  %p1041_p12 = scmp.ne.s32.totalorder %s680_s28, %s1040_s7  ;;  %p1046_p0 = scmp.lt.s32.totalorder %s1040_s7, %s1040_s7 }
  0x6b   :  { %p1047_p1 = por %p1046_p0, %p1045_p13 }
  0x6c   :  { %789 = vmatpush3.bf16.msra.mxu0 %v894_v7  ;;  %809 = vmatpush3.bf16.msra.mxu1 %v902_v12 }
  0x6d   :  { %790 = vmatprep.subr.bf16.mxu0 %v1077_v0  ;;  %810 = vmatprep.subr.bf16.mxu1 %v1077_v0  ;;  %p1048_p2 = pnand %p1047_p1, %p1041_p12 }
  0x70   :  { %791 = vmatpush3.bf16.msra.mxu0 %v895_v9  ;;  %811 = vmatpush3.bf16.msra.mxu1 %v903_v14 }
  0x71   :  { %792 = vmatprep.subr.bf16.mxu0 %v1077_v0  ;;  %812 = vmatprep.subr.bf16.mxu1 %v1077_v0 }
  0x74   :  { %793 = vmatpush3.bf16.msra.mxu0 %v896_v11  ;;  %813 = vmatpush3.bf16.msra.mxu1 %v904_v16  ;;  %v726_v11 = vld [vmem:[%s1318_s9] ss:$0 sm:$0xff] }
  0x75   :  { %794 = vmatprep.subr.bf16.mxu0 %v1077_v0  ;;  %814 = vmatprep.subr.bf16.mxu1 %v1077_v0 }
  0x78   :  { %795 = vmatpush3.bf16.msra.mxu0 %v897_v13  ;;  %815 = vmatpush3.bf16.msra.mxu1 %v905_v17 }
  0x79   :  { %820 = vmatprep.subr.bf16.mxu0 %v1077_v0  ;;  %840 = vmatprep.subr.bf16.mxu1 %v1077_v0 }
  0x7b   :  { %797 = vmatmul.mubr.bf16.vlgmr.msra.gmra.mrb[0].mxu0 %v108_v15 }
  0x7c   :  { %836 = vmatprep.mubr.msk.bf16.mxu0 %vm1078_vm0, %v1077_v0  ;;  %821 = vmatpush3.bf16.msra.mxu0 %v906_v18 }
  0x7d   :  { %822 = vmatprep.subr.bf16.mxu0 %v1077_v0 }
  0x80   :  { %823 = vmatpush3.bf16.msra.mxu0 %v907_v19 }
  0x81   :  { %824 = vmatprep.subr.bf16.mxu0 %v1077_v0 }
  0x84   :  { %825 = vmatpush3.bf16.msra.mxu0 %v908_v20 }
  0x85   :  { %826 = vmatprep.subr.bf16.mxu0 %v1077_v0 }
  0x88   :  { %827 = vmatpush3.bf16.msra.mxu0 %v909_v21 }
  0x89   :  { %828 = vmatprep.subr.bf16.mxu0 %v1077_v0 }
  0x8c   :  { %829 = vmatpush3.bf16.msra.mxu0 %v910_v22 }
  0x8d   :  { %830 = vmatprep.subr.bf16.mxu0 %v1077_v0 }
  0x90   :  { %831 = vmatpush3.bf16.msra.mxu0 %v911_v23 }
  0x91   :  { %832 = vmatprep.subr.bf16.mxu0 %v1077_v0 }
  0x94   :  { %833 = vmatpush3.bf16.msra.mxu0 %v912_v32 }
  0x95   :  { %834 = vmatprep.subr.bf16.mxu0 %v1077_v0 }
  0x98   :  { %835 = vmatpush3.bf16.msra.mxu0 %v913_v33 }
  0x99   :  { %860 = vmatprep.subr.bf16.mxu0 %v1077_v0 }
 0x14e   :  { %v214_v25 = vpop.f32.mrb[0].mxu0 }
 0x14f   :  { %v215_v26 = vadd.f32 %v690_v24, %v214_v25  ;;  %v798_v27 = vpop.f32.mrb[1].mxu0 }
 0x150   :  { %v217_v28 = vpop.f32.mrb[2].mxu0 }
 0x151   :  { %v220_v29 = vmax.f32 %v215_v26, 0.0  ;;  %v799_v30 = vpop.f32.mrb[3].mxu0 }
 0x153   :  { %v221_v31 = vpack.c.bf16 %v220_v29, %v220_v29 }
 0x155   :  { %817 = vmatmul.mubr.bf16.vlgmr.msra.gmra.mrb[0].mxu1 %v221_v31 }
 0x156   :  { %856 = vmatprep.mubr.msk.bf16.mxu1 %vm1078_vm0, %v1077_v0  ;;  %841 = vmatpush3.bf16.msra.mxu1 %v914_v34 }
 0x157   :  { %842 = vmatprep.subr.bf16.mxu1 %v1077_v0 }
 0x15a   :  { %843 = vmatpush3.bf16.msra.mxu1 %v915_v35 }
 0x15b   :  { %844 = vmatprep.subr.bf16.mxu1 %v1077_v0 }
 0x15e   :  { %845 = vmatpush3.bf16.msra.mxu1 %v916_v36 }
 0x15f   :  { %846 = vmatprep.subr.bf16.mxu1 %v1077_v0 }
 0x162   :  { %847 = vmatpush3.bf16.msra.mxu1 %v917_v37 }
 0x163   :  { %848 = vmatprep.subr.bf16.mxu1 %v1077_v0 }
 0x166   :  { %849 = vmatpush3.bf16.msra.mxu1 %v918_v38 }
 0x167   :  { %850 = vmatprep.subr.bf16.mxu1 %v1077_v0 }
 0x16a   :  { %851 = vmatpush3.bf16.msra.mxu1 %v919_v39 }
 0x16b   :  { %852 = vmatprep.subr.bf16.mxu1 %v1077_v0 }
 0x16e   :  { %853 = vmatpush3.bf16.msra.mxu1 %v920_v48 }
 0x16f   :  { %854 = vmatprep.subr.bf16.mxu1 %v1077_v0 }
 0x172   :  { %855 = vmatpush3.bf16.msra.mxu1 %v921_v49 }
 0x228   :  { %v327_v41 = vpop.f32.mrb[0].mxu1 }
 0x229   :  { %v328_v42 = vadd.f32 %v699_v40, %v327_v41  ;;  %v818_v43 = vpop.f32.mrb[1].mxu1 }
 0x22a   :  { %v330_v44 = vpop.f32.mrb[2].mxu1 }
 0x22b   :  { %v333_v45 = vmax.f32 %v328_v42, 0.0  ;;  %v819_v46 = vpop.f32.mrb[3].mxu1 }
 0x22d   :  { %v334_v47 = vpack.c.bf16 %v333_v45, %v333_v45 }
 0x22f   :  { %837 = vmatmul.mubr.bf16.vlgmr.msra.gmra.mrb[4].mxu0 %v334_v47 }
 0x230   :  { %876 = vmatprep.mubr.msk.bf16.mxu0 %vm1078_vm0, %v1077_v0  ;;  %861 = vmatpush3.bf16.msra.mxu0 %v922_v50 }
 0x231   :  { %862 = vmatprep.subr.bf16.mxu0 %v1077_v0 }
 0x234   :  { %863 = vmatpush3.bf16.msra.mxu0 %v923_v51 }
 0x235   :  { %864 = vmatprep.subr.bf16.mxu0 %v1077_v0 }
 0x238   :  { %865 = vmatpush3.bf16.msra.mxu0 %v924_v52 }
 0x239   :  { %866 = vmatprep.subr.bf16.mxu0 %v1077_v0 }
 0x23c   :  { %867 = vmatpush3.bf16.msra.mxu0 %v925_v53 }
 0x23d   :  { %868 = vmatprep.subr.bf16.mxu0 %v1077_v0 }
 0x240   :  { %869 = vmatpush3.bf16.msra.mxu0 %v926_v54 }
 0x241   :  { %870 = vmatprep.subr.bf16.mxu0 %v1077_v0 }
 0x244   :  { %871 = vmatpush3.bf16.msra.mxu0 %v927_v55 }
 0x245   :  { %872 = vmatprep.subr.bf16.mxu0 %v1077_v0 }
 0x248   :  { %873 = vmatpush3.bf16.msra.mxu0 %v928_v1 }
 0x249   :  { %874 = vmatprep.subr.bf16.mxu0 %v1077_v0 }
 0x24c   :  { %875 = vmatpush3.bf16.msra.mxu0 %v929_v2 }
 0x302   :  { %v440_v57 = vpop.f32.mrb[4].mxu0 }
 0x303   :  { %v441_v58 = vadd.f32 %v708_v56, %v440_v57  ;;  %v838_v59 = vpop.f32.mrb[5].mxu0 }
 0x304   :  { %v443_v60 = vpop.f32.mrb[6].mxu0 }
 0x305   :  { %v446_v61 = vmax.f32 %v441_v58, 0.0  ;;  %v839_v62 = vpop.f32.mrb[7].mxu0 }
 0x307   :  { %v447_v63 = vpack.c.bf16 %v446_v61, %v446_v61 }
 0x309   :  { %857 = vmatmul.mubr.bf16.vlgmr.msra.gmra.mrb[4].mxu1 %v447_v63 }
 0x3dc   :  { %v553_v4 = vpop.f32.mrb[4].mxu1 }
 0x3dd   :  { %v554_v5 = vadd.f32 %v717_v3, %v553_v4  ;;  %v858_v6 = vpop.f32.mrb[5].mxu1 }
 0x3de   :  { %v556_v7 = vpop.f32.mrb[6].mxu1 }
 0x3df   :  { %v559_v8 = vmax.f32 %v554_v5, 0.0  ;;  %v859_v9 = vpop.f32.mrb[7].mxu1 }
 0x3e1   :  { %v560_v10 = vpack.c.bf16 %v559_v8, %v559_v8 }
 0x3e3   :  { %877 = vmatmul.mubr.bf16.vlgmr.msra.gmra.mrb[8].mxu0 %v560_v10 }
 0x4b6   :  { %v666_v0 = vpop.f32.mrb[8].mxu0 }
 0x4b7   :  { %v667_v12 = vadd.f32 %v726_v11, %v666_v0  ;;  %v878_v13 = vpop.f32.mrb[9].mxu0 }
 0x4b8   :  { %v669_v14 = vpop.f32.mrb[10].mxu0 }
 0x4b9   :  { %672 = vst [vmem:[#allocation11] sm:$0xff] %v667_v12  ;;  %v879_v15 = vpop.f32.mrb[11].mxu0 }
 0x4ba   :  { %1051 = shalt.err (!%p1048_p2)
}
 0x4bb   :  { %s1052_s9 = scalar_lea.hbm %s1320_s11, 128 }
 0x4bc   :  { %p1053_p3 = scmp.ne.s32.totalorder %s1320_s11, %s1052_s9  ;;  %p1056_p4 = scmp.lt.u32.totalorder %s1052_s9, %s1320_s11 }
 0x4be   :  { %p1058_p5 = pnand %p1056_p4, %p1053_p3 }
 0x4c0   :  { %1061 = shalt.err (!%p1058_p5)
}
 0x4c1   :  { %682 = dma.vmem_to_hbm [thread:$0]  %s680_s28, 128, %s1320_s11, [#allocation4]  }
 0x4c2   :  { %1068 = dma.done.wait [#allocation4], 128  }
 0x4c3   :  { %1069 = vsyncadd [#allocation4], 4294967168 }
 0x4c4   :  { %686 = vsyncpa [#allocation3], 1 }
 0x4c5   :  { %687 = vsyncpa [#allocation6], 1 }
 0x4c6   :  { %688 = vsyncpa [#allocation9], 1 }
 0x4c7   :  { %689 = vsyncpa [#allocation4], 1 }

</bundles_post_ra>
